<compile_context>
chip_gen: v6e
topology: v6e:2x2x1
jax: 0.10.0
libtpu: 0.0.40
codegen_flags: <defaults>
</compile_context>

<pallas_src>
import functools

import jax
import jax.numpy as jnp
from jax.experimental import pallas as pl
from jax.experimental.pallas import tpu as pltpu


def _round_up(x, m):
    return (x + m - 1) // m * m


def _vmem_capacity_bytes():
    """Chip VMEM capacity; conservative v7x fallback if query unavailable."""
    try:
        return int(pltpu.get_tpu_info().vmem_capacity_bytes)
    except Exception:  # pragma: no cover - older jax / non-TPU tracing
        return 64 * 1024 * 1024


def _ffn_kernel(x_ref, w13_ref, w2_ref, o_ref, acc_ref, *, tn):
    # x_ref:   (tm, dim)   bf16 token tile
    # w13_ref: (dim, 2*tn) bf16, cols [0:tn] = W1^T tile, [tn:2*tn] = W3^T tile
    # w2_ref:  (tn, dim)   bf16 down-projection tile
    # o_ref:   (tm, dim)
    # acc_ref: (tm, dim) f32, resident across the hidden (reduction) axis
    n = pl.program_id(1)

    @pl.when(n == 0)
    def _():
        acc_ref[...] = jnp.zeros_like(acc_ref)

    x = x_ref[...]
    # Fused gate/up projection: one weight-stationary MXU pass per hidden tile,
    # f32 accumulation out of the MXU.
    h = jnp.dot(x, w13_ref[...], preferred_element_type=jnp.float32)
    h1 = h[:, :tn]          # gate (f32)
    h3 = h[:, tn:]          # up   (f32)
    # SiLU in f32; sigmoid's exp runs on the EUP (separate bundle slot).
    gated = (h1 * jax.nn.sigmoid(h1)) * h3
    # TODO(synk): on v5e, sub-chunk the hidden tile here (unrolled fori_loop
    # over 256-wide slices) if bundle dumps show vst-slot saturation.
    acc_ref[...] += jnp.dot(gated.astype(w2_ref.dtype), w2_ref[...],
                            preferred_element_type=jnp.float32)

    @pl.when(n == pl.num_programs(1) - 1)
    def _():
        o_ref[...] = acc_ref[...].astype(o_ref.dtype)


def prepare_ffn_weights(w1, w2, w3, *, tn, compute_dtype=jnp.bfloat16):
    """One-time weight prep (hoisted out of the hot path).

    w1, w3: (hidden, dim) PyTorch Linear (out, in) layout; w2: (dim, hidden).
    Returns:
      w13: (dim, 2*hidden) compute_dtype, per-`tn`-tile interleaved [gate|up].
      w2t: (hidden, dim)   compute_dtype.
    NOTE: `tn` here must match the `tn` passed to feed_forward_pallas.
    """
    hidden, dim = w1.shape
    assert hidden % tn == 0, "hidden must be divisible by the hidden tile tn"
    assert tn % 128 == 0, "hidden tile must be lane-aligned (multiple of 128)"
    nt = hidden // tn
    w1t = jnp.transpose(w1).reshape(dim, nt, tn)
    w3t = jnp.transpose(w3).reshape(dim, nt, tn)
    w13 = jnp.concatenate([w1t, w3t], axis=2).reshape(dim, nt * 2 * tn)
    w2t = jnp.transpose(w2)  # (hidden, dim)
    return w13.astype(compute_dtype), w2t.astype(compute_dtype)


def _tile_footprint_bytes(tm, tn, dim, out_itemsize, compute_itemsize):
    """Estimated VMEM footprint with BlockSpec double-buffering."""
    x_tile = tm * dim * compute_itemsize * 2
    w13_tile = dim * 2 * tn * compute_itemsize * 2
    w2_tile = tn * dim * compute_itemsize * 2
    out_tile = tm * dim * out_itemsize * 2
    acc = tm * dim * 4                      # f32 scratch, single buffer
    return x_tile + w13_tile + w2_tile + out_tile + acc


def _pick_tiles(M, dim, hidden, tm, tn, out_itemsize, compute_itemsize):
    """Pick (tm, tn, M_pad, vmem_limit) respecting the chip's VMEM capacity."""
    cap = _vmem_capacity_bytes()
    cap_allow = int(cap * 0.85)

    if tn is None:
        tn = 512
    tn = min(tn, hidden)
    assert hidden % tn == 0 and tn % 128 == 0

    if tm is None:
        # Weight slabs are re-streamed once per M tile, so arithmetic intensity
        # w.r.t. weight bytes is tm FLOP/byte (bf16).  Compute-bound thresholds:
        # ~240 (v5e), ~680 (v6e), ~310 (v7x).  Big-VMEM parts get the big tile.
        tm = 768 if cap >= 100 * 1024 * 1024 else 512

    # bf16 packs 2 rows per sublane -> keep tm a multiple of 16; don't
    # over-tile tiny inputs.
    tm = max(16, min(tm, _round_up(M, 16)))
    tm = _round_up(tm, 16)

    # Keep >= 2 M tiles when there is enough work, so the "parallel" M axis
    # can shard across v7x's 2 TensorCores.
    if M > tm // 2 and _round_up(M, tm) // tm == 1 and M >= 32:
        tm = max(16, _round_up(_round_up(M, 2) // 2, 16))

    # Shrink tn, then tm, until the tile footprint fits the chip's VMEM.
    while (_tile_footprint_bytes(tm, tn, dim, out_itemsize, compute_itemsize)
           > cap_allow and tn > 128 and hidden % (tn // 2) == 0):
        tn //= 2
    while (_tile_footprint_bytes(tm, tn, dim, out_itemsize, compute_itemsize)
           > cap_allow and tm > 16):
        tm = max(16, _round_up(tm // 2, 16))

    est = _tile_footprint_bytes(tm, tn, dim, out_itemsize, compute_itemsize)
    vmem_limit = min(cap_allow, max(32 * 1024 * 1024, int(est * 1.3)))
    M_pad = _round_up(M, tm)
    return tm, tn, M_pad, vmem_limit


def feed_forward_pallas(x, w13, w2t, *, tm=None, tn=None, weight_buffers=None):
    """SwiGLU FFN on prepared (bf16) weights.  x: (..., dim).

    `tn` must equal the tile width used in prepare_ffn_weights.
    `weight_buffers=3` deepens weight-slab pipelining (v5e exposed-DMA cases).
    """
    orig_shape = x.shape
    out_dtype = x.dtype
    dim = orig_shape[-1]
    hidden = w2t.shape[0]
    assert w13.shape == (dim, 2 * hidden)

    compute_dtype = w13.dtype
    xm = x.reshape(-1, dim).astype(compute_dtype)
    M = xm.shape[0]

    tm, tn, M_pad, vmem_limit = _pick_tiles(
        M, dim, hidden, tm, tn,
        out_itemsize=jnp.dtype(out_dtype).itemsize,
        compute_itemsize=jnp.dtype(compute_dtype).itemsize)
    assert hidden % tn == 0 and tn % 128 == 0

    if M_pad != M:
        xm = jnp.pad(xm, ((0, M_pad - M), (0, 0)))

    num_m_tiles = M_pad // tm
    grid = (num_m_tiles, hidden // tn)

    flops = 6 * M_pad * dim * hidden          # 2*M*(2*dim*hidden + hidden*dim)
    # Weight slabs are re-streamed once per M tile.
    w_bytes = (w13.size * w13.dtype.itemsize + w2t.size * w2t.dtype.itemsize)
    bytes_accessed = (xm.size * xm.dtype.itemsize
                      + w_bytes * num_m_tiles
                      + M_pad * dim * jnp.dtype(out_dtype).itemsize)

    def _wspec(shape, imap):
        if weight_buffers is not None and weight_buffers != 2:
            return pl.BlockSpec(shape, imap,
                                pipeline_mode=pl.Buffered(weight_buffers))
        return pl.BlockSpec(shape, imap)

    out = pl.pallas_call(
        functools.partial(_ffn_kernel, tn=tn),
        out_shape=jax.ShapeDtypeStruct((M_pad, dim), out_dtype),
        grid_spec=pltpu.PrefetchScalarGridSpec(
            num_scalar_prefetch=0,
            grid=grid,
            in_specs=[
                pl.BlockSpec((tm, dim), lambda i, n: (i, 0)),      # x tile
                _wspec((dim, 2 * tn), lambda i, n: (0, n)),        # [W1^T|W3^T]
                _wspec((tn, dim), lambda i, n: (n, 0)),            # W2^T tile
            ],
            out_specs=pl.BlockSpec((tm, dim), lambda i, n: (i, 0)),
            scratch_shapes=[pltpu.VMEM((tm, dim), jnp.float32)],
        ),
        compiler_params=pltpu.CompilerParams(
            dimension_semantics=("parallel", "arbitrary"),
            vmem_limit_bytes=vmem_limit,
        ),
        cost_estimate=pl.CostEstimate(
            flops=flops,
            transcendentals=M_pad * hidden,
            bytes_accessed=bytes_accessed,
        ),
    )(xm, w13, w2t)

    if M_pad != M:
        out = out[:M]
    return out.reshape(orig_shape)


def llama_ffn_hidden_dim(dim, hidden_dim, multiple_of, ffn_dim_multiplier):
    hidden_dim = int(2 * hidden_dim / 3)
    if ffn_dim_multiplier is not None:
        hidden_dim = int(ffn_dim_multiplier * hidden_dim)
    hidden_dim = multiple_of * ((hidden_dim + multiple_of - 1) // multiple_of)
    return hidden_dim


def reference_ffn(x, w1, w2, w3):
    h1 = x @ w1.T
    h3 = x @ w3.T
    return (jax.nn.silu(h1) * h3) @ w2.T


if __name__ == "__main__":
    # Small LLaMA-style FFN config (hidden lands on a lane-aligned 256).
    dim = 128
    hidden_dim_arg = 384
    multiple_of = 32
    ffn_dim_multiplier = None
    hidden = llama_ffn_hidden_dim(dim, hidden_dim_arg, multiple_of,
                                  ffn_dim_multiplier)  # -> 256

    batch, seq = 2, 9          # M = 18: exercises padding to the token tile

    key = jax.random.PRNGKey(0)
    kx, k1, k2, k3 = jax.random.split(key, 4)
    x = jax.random.normal(kx, (batch, seq, dim), dtype=jnp.float32)
    # Deterministic "Linear(bias=False)" weights in PyTorch (out, in) layout.
    w1 = jax.random.normal(k1, (hidden, dim), dtype=jnp.float32) * 0.02
    w2 = jax.random.normal(k2, (dim, hidden), dtype=jnp.float32) * 0.02
    w3 = jax.random.normal(k3, (hidden, dim), dtype=jnp.float32) * 0.02

    # Small tiles here so the grid exercises both axes (2 token tiles x 2
    # hidden tiles + accumulator + padding path).  Production: tm/tn defaults.
    tm, tn = 16, 128
    w13, w2t = prepare_ffn_weights(w1, w2, w3, tn=tn)   # one-time prep (bf16)

    out = feed_forward_pallas(x, w13, w2t, tm=tm, tn=tn)
    out = jax.block_until_ready(out)

    ref = reference_ffn(x, w1, w2, w3)
    assert out.shape == ref.shape == (batch, seq, dim)
    # bf16 operands (f32 accumulation): compare with a bf16-appropriate bound.
    rel_err = float(jnp.max(jnp.abs(out.astype(jnp.float32) - ref))
                    / (jnp.max(jnp.abs(ref)) + 1e-12))
    assert rel_err < 2e-2, f"mismatch vs reference, rel_err={rel_err}"

    print("KERNEL_OK")
</pallas_src>

<mosaic_0001>
module attributes {stable_mosaic.version = 11 : i64} {
  func.func @_ffn_kernel(%arg0: i32, %arg1: i32, %arg2: memref<16x128xbf16, #tpu.memory_space<vmem>>, %arg3: memref<128x256xbf16, #tpu.memory_space<vmem>>, %arg4: memref<128x128xbf16, #tpu.memory_space<vmem>>, %arg5: memref<16x128xf32, #tpu.memory_space<vmem>>, %arg6: memref<16x128xf32, #tpu.memory_space<vmem>>) attributes {dimension_semantics = [#tpu.dimension_semantics<parallel>, #tpu.dimension_semantics<arbitrary>], iteration_bounds = array<i64: 2, 2>, scalar_prefetch = 0 : i64, scratch_operands = 1 : i64, tpu.core_type = #tpu.core_type<tc>, window_params = [{transform_indices = @transform_0, window_bounds = array<i64: 16, 128>}, {transform_indices = @transform_1, window_bounds = array<i64: 128, 256>}, {transform_indices = @transform_2, window_bounds = array<i64: 128, 128>}, {transform_indices = @transform_3, window_bounds = array<i64: 16, 128>}]} {
    %c0_i32 = arith.constant 0 : i32
    %0 = arith.cmpi eq, %arg1, %c0_i32 : i32
    %1 = arith.extui %0 : i1 to i32
    %c0_i32_0 = arith.constant 0 : i32
    %2 = arith.cmpi ne, %1, %c0_i32_0 : i32
    scf.if %2 {
      %cst_13 = arith.constant 0.000000e+00 : f32
      %24 = vector.broadcast %cst_13 : f32 to vector<16x128xf32>
      %c0_14 = arith.constant 0 : index
      %c0_15 = arith.constant 0 : index
      %25 = vector.load %arg6[%c0_14, %c0_15] : memref<16x128xf32, #tpu.memory_space<vmem>>, vector<16x128xf32>
      tpu.vector_store %arg6[%c0_14, %c0_15], %24 {strides = array<i32>} : memref<16x128xf32, #tpu.memory_space<vmem>>, vector<16x128xf32>,
    } else {
    }
    %c0 = arith.constant 0 : index
    %c0_1 = arith.constant 0 : index
    %3 = vector.load %arg2[%c0, %c0_1] : memref<16x128xbf16, #tpu.memory_space<vmem>>, vector<16x128xbf16>
    %c0_2 = arith.constant 0 : index
    %c0_3 = arith.constant 0 : index
    %4 = vector.load %arg3[%c0_2, %c0_3] : memref<128x256xbf16, #tpu.memory_space<vmem>>, vector<128x256xbf16>
    %cst = arith.constant dense<0.000000e+00> : vector<16x256xf32>
    %5 = tpu.matmul %3, %4, %cst {dimension_numbers = #tpu.dot_dimension_numbers<[1], [0], [0], [1], [0, 0, 1, 1], [], []>} : vector<16x128xbf16>, vector<128x256xbf16>, vector<16x256xf32> -> vector<16x256xf32>
    %6 = vector.extract_strided_slice %5 {offsets = [0, 0], sizes = [16, 128], strides = [1, 1]} : vector<16x256xf32> to vector<16x128xf32>
    %7 = vector.extract_strided_slice %5 {offsets = [0, 128], sizes = [16, 128], strides = [1, 1]} : vector<16x256xf32> to vector<16x128xf32>
    %8 = arith.negf %6 : vector<16x128xf32>
    %9 = math.exp %8 : vector<16x128xf32>
    %cst_4 = arith.constant 1.000000e+00 : f32
    %10 = vector.broadcast %cst_4 : f32 to vector<16x128xf32>
    %11 = arith.addf %10, %9 : vector<16x128xf32>
    %12 = arith.divf %10, %11 : vector<16x128xf32>
    %13 = arith.mulf %6, %12 : vector<16x128xf32>
    %14 = arith.mulf %13, %7 : vector<16x128xf32>
    %c0_5 = arith.constant 0 : index
    %c0_6 = arith.constant 0 : index
    %15 = vector.load %arg6[%c0_5, %c0_6] : memref<16x128xf32, #tpu.memory_space<vmem>>, vector<16x128xf32>
    %16 = arith.truncf %14 : vector<16x128xf32> to vector<16x128xbf16>
    %c0_7 = arith.constant 0 : index
    %c0_8 = arith.constant 0 : index
    %17 = vector.load %arg4[%c0_7, %c0_8] : memref<128x128xbf16, #tpu.memory_space<vmem>>, vector<128x128xbf16>
    %cst_9 = arith.constant dense<0.000000e+00> : vector<16x128xf32>
    %18 = tpu.matmul %16, %17, %cst_9 {dimension_numbers = #tpu.dot_dimension_numbers<[1], [0], [0], [1], [0, 0, 1, 1], [], []>} : vector<16x128xbf16>, vector<128x128xbf16>, vector<16x128xf32> -> vector<16x128xf32>
    %19 = arith.addf %15, %18 : vector<16x128xf32>
    %c0_10 = arith.constant 0 : index
    %c0_11 = arith.constant 0 : index
    %20 = vector.load %arg6[%c0_10, %c0_11] : memref<16x128xf32, #tpu.memory_space<vmem>>, vector<16x128xf32>
    tpu.vector_store %arg6[%c0_10, %c0_11], %19 {strides = array<i32>} : memref<16x128xf32, #tpu.memory_space<vmem>>, vector<16x128xf32>,
    %c1_i32 = arith.constant 1 : i32
    %21 = arith.cmpi eq, %arg1, %c1_i32 : i32
    %22 = arith.extui %21 : i1 to i32
    %c0_i32_12 = arith.constant 0 : i32
    %23 = arith.cmpi ne, %22, %c0_i32_12 : i32
    scf.if %23 {
      %c0_13 = arith.constant 0 : index
      %c0_14 = arith.constant 0 : index
      %24 = vector.load %arg6[%c0_13, %c0_14] : memref<16x128xf32, #tpu.memory_space<vmem>>, vector<16x128xf32>
      %c0_15 = arith.constant 0 : index
      %c0_16 = arith.constant 0 : index
      %25 = vector.load %arg5[%c0_15, %c0_16] : memref<16x128xf32, #tpu.memory_space<vmem>>, vector<16x128xf32>
      tpu.vector_store %arg5[%c0_15, %c0_16], %24 {strides = array<i32>} : memref<16x128xf32, #tpu.memory_space<vmem>>, vector<16x128xf32>,
    } else {
    }
    return
  }
  func.func @transform_0(%arg0: i32, %arg1: i32) -> (i32, i32) {
    %c0_i32 = arith.constant 0 : i32
    %c0_i32_0 = arith.constant 0 : i32
    return %arg0, %c0_i32 : i32, i32
  }
  func.func @transform_1(%arg0: i32, %arg1: i32) -> (i32, i32) {
    %c0_i32 = arith.constant 0 : i32
    %c0_i32_0 = arith.constant 0 : i32
    return %c0_i32, %arg1 : i32, i32
  }
  func.func @transform_2(%arg0: i32, %arg1: i32) -> (i32, i32) {
    %c0_i32 = arith.constant 0 : i32
    %c0_i32_0 = arith.constant 0 : i32
    return %arg1, %c0_i32 : i32, i32
  }
  func.func @transform_3(%arg0: i32, %arg1: i32) -> (i32, i32) {
    %c0_i32 = arith.constant 0 : i32
    %c0_i32_0 = arith.constant 0 : i32
    return %arg0, %c0_i32 : i32, i32
  }
}

</mosaic_0001>

<bundles_post_ra>
// kernel: tpu_custom_call.1
= control target key start
LH: loop header
LB: loop body
LE: loop exit
PB: predicated region body
PF: predicated region fallthrough
CT: control target
= control target key end

     0   :  { %s1523_s0 = inlined_call_operand.hbm [shape: bf16[32,128], index: 0, kind: input, shape index: {}]   ;;  %s1524_s1 = inlined_call_operand.hbm [shape: bf16[128,512], index: 1, kind: input, shape index: {}]   ;;  %s1525_s2 = inlined_call_operand.hbm [shape: bf16[256,128], index: 2, kind: input, shape index: {}]   ;;  %s1526_s3 = inlined_call_operand.hbm [shape: f32[32,128], index: 3, kind: output, shape index: {}]  }
   0x1   :  { %1539 = sst [smem:[#allocation22_spill]] %s1523_s0 }
   0x2   :  { %1540 = sst [smem:[#allocation23_spill]] %s1524_s1 }
   0x3   :  { %1541 = sst [smem:[#allocation24_spill]] %s1526_s3 }
   0x4   :  { %8 = vsyncpa [#allocation4], 0 }
   0x5   :  { %10 = vsyncpa [#allocation4 + $0x1], 0 }
   0x6   :  { %11 = vsyncpa [#allocation7], 0 }
   0x7   :  { %13 = vsyncpa [#allocation7 + $0x1], 0 }
   0x8   :  { %14 = vsyncpa [#allocation5], 0 }
   0x9   :  { %16 = vsyncpa [#allocation5 + $0x1], 0  ;;  %s1207_s12 = smov 0   ;;  %s1209_s13 = smov 0  }
   0xa   :  { %s1211_s14 = smov 0   ;;  %s1213_s15 = smov 0  }
   0xb   :  { %s1215_s16 = smov 0   ;;  %s1217_s17 = smov 0  }
   0xc   :  { %s1219_s18 = smov 0   ;;  %s1221_s19 = smov 0  }
   0xd   :  { %s1223_s20 = smov 0   ;;  %s1225_s21 = smov 0  }
   0xe   :  { %s1227_s22 = smov 0  }
   0xf LB: > { %1542 = sst [smem:[#allocation13_spill]] %s1138_s14  ;;  %s31_s23 = sadd.s32 1, %s1162_s20  ;;  %s1170_s22 = sphi %s1227_s22, %s22_s22   ;;  %s1166_s21 = sphi %s1225_s21, %s1575_s21   ;;  %s1162_s20 = sphi %s1223_s20, %s1581_s20   ;;  %s1158_s19 = sphi %s1221_s19, %s1573_s19   ;;  %s1154_s18 = sphi %s1219_s18, %s1580_s18   ;;  %s1150_s17 = sphi %s1217_s17, %s1572_s17   ;;  %s1146_s16 = sphi %s1215_s16, %s1579_s16   ;;  %s1142_s15 = sphi %s1213_s15, %s1578_s15   ;;  %s1138_s14 = sphi %s1211_s14, %s1570_s14   ;;  %s1134_s13 = sphi %s1209_s13, %s1577_s13   ;;  %s1130_s12 = sphi %s1207_s12, %s1576_s12  }
  0x10   : > { %1543 = sst [smem:[#allocation14_spill]] %s1150_s17  ;;  %p49_p0 = scmp.eq.s32.totalorder %s1170_s22, 0 }
  0x11   : > { %1544 = sst [smem:[#allocation15_spill]] %s1166_s21  ;;  %p1264_p1 = scmp.ge.s32.totalorder %s31_s23, 2 }
  0x12   : > { %s67_s25 = sadd.s32 1, %s1138_s14  ;;  %p74_p2 = scmp.ne.s32.totalorder %s1138_s14, %s1134_s13 }
  0x13   : > { %p80_p3 = scmp.ne.s32.totalorder %s1134_s13, %s1130_s12  ;;  %s1583_s23 = smov (%p1264_p1, %s31_s23), 0 }
  0x14   : > { %1546 = sst [smem:[#allocation16_spill]] %s1583_s23  ;;  %p76_p4 = por %p74_p2, %p49_p0 }
  0x15   : > { %s64_s26 = ssub.s32 %s1162_s20, %s1583_s23  ;;  %p1529_p5 = scmp.lt.s32.totalorder %s1170_s22, 4 }
  0x16   : > { %p65_p6 = scmp.eq.s32.totalorder %s64_s26, 0  ;;  %s177_s27 = sand.u32 1, %s1170_s22  }
  0x17   : > { %s1528_s28 = sand.u32 1, %s1138_s14   ;;  %s766_s4 = sshll.u32 %s1162_s20, 7 }
  0x18   : > { %s1285_s29 = scalar_select %p65_p6, %s1138_s14, %s67_s25  }
  0x19   : > { %s720_s30 = sshll.u32 %s1528_s28, 7  ;;  %s1548_s1 = sld [smem:[#allocation23_spill]] }
  0x1a   : > { %1547 = sst [smem:[#allocation17_spill]] %s1285_s29  ;;  %s181_s8 = scalar_lea.vmem [#allocation6], %s720_s30 }
  0x1b   : > { %s188_s9 = sshll.u32 %s181_s8, 4  ;;  %p1295_p7 = pnand %p1529_p5, %p76_p4  ;;  %s189_s9 = int_to_ptr.vmem [resolvable:$true] %s188_s9 }
  0x1c   : > { %p726_p8 = scmp.ge.s32.totalorder %s1170_s22, 1  ;;  %s1300_s11 = scalar_lea.sflag [#allocation7], %s177_s27 }
  0x1d   : > { %p1527_p9 = pneg %p1295_p7  ;;  %s975_s25 = scalar_lea.vmem %s189_s9, 2048 }
  0x1e   : > { %p976_p10 = scmp.ne.s32.totalorder %s189_s9, %s975_s25  ;;  %s1172_s26 = smov [#allocation6]  }
  0x1f   : > { %s187_s7 = scalar_lea.hbm %s1548_s1, %s766_s4  ;;  %s980_s30 = sshll.u32 %s1172_s26, 4  ;;  %s981_s30 = int_to_ptr.vmem [resolvable:$false] %s980_s30 }
  0x20   : > { %p978_p11 = pnand %p976_p10, %p1527_p9  ;;  %s982_s4 = scalar_lea.vmem %s981_s30, 4096 }
  0x21   : > { %p983_p13 = scmp.lt.s32.totalorder %s189_s9, %s981_s30  ;;  %p984_p2 = scmp.lt.s32.totalorder %s982_s4, %s975_s25 }
  0x22   : > { %p979_p12 = pneg %p978_p11 }
  0x23   : > { %p985_p4 = por %p984_p2, %p983_p13 }
  0x25   : > { %p986_p6 = pnand %p985_p4, %p979_p12 }
  0x27   : > { %989 = shalt.err (!%p986_p6)
}
  0x28   : > { %s1173_s5 = smov 256   ;;  %s1174_s27 = smov 128  }
  0x29   : > { %s1175_s6 = smov 8   ;;  %p217_p10 = scmp.lt.s32.totalorder %s1170_s22, 5 }
  0x2a   : > { %812 = dma.hbm_to_vmem [thread:$0]  (!%p1295_p7), %s187_s7, 2048, %s189_s9, %s1300_s11, %s1173_s5, %s1174_s27, %s1175_s6  }
  0x2b   : > { %p1313_p11 = pnand %p726_p8, %p217_p10  ;;  %s1318_s25 = sadd.s32 4294967295, %s1170_s22  }
  0x2c   : > { %s714_s26 = sadd.s32 4294967294, %s1170_s22   ;;  %s34_s30 = sadd.s32 1, %s1166_s21 }
  0x2d   : > { %s41_s4 = sadd.s32 1, %s1150_s17  ;;  %s1585_s30 = smov (!%p1264_p1, %s34_s30), %s1166_s21 }
  0x2e   : > { %p48_p12 = scmp.ne.s32.totalorder %s1150_s17, %s1146_s16  ;;  %p54_p13 = scmp.ne.s32.totalorder %s1146_s16, %s1142_s15 }
  0x2f   : > { %p36_p8 = scmp.ge.s32.totalorder %s1585_s30, 2  ;;  %p55_p2 = scmp.eq.s32.totalorder %s1318_s25, 0 }
  0x30   : > { %p1333_p4 = por %p49_p0, %p48_p12  ;;  %p130_p6 = scmp.eq.s32.totalorder %s1318_s25, 3 }
  0x31   : > { %s1587_s30 = smov (%p36_p8, %s1585_s30), 0  ;;  %p1343_p1 = por %p55_p2, %p54_p13 }
  0x32   : > { %1552 = sst [smem:[#allocation18_spill]] %s1587_s30  ;;  %p1350_p10 = por %p80_p3, %p55_p2 }
  0x33   : > { %s38_s5 = ssub.s32 %s1166_s21, %s1587_s30  ;;  %p1356_p0 = por %p130_p6, %p48_p12 }
  0x34   : > { %p39_p9 = scmp.eq.s32.totalorder %s38_s5, 0  ;;  %p136_p8 = scmp.eq.s32.totalorder %s714_s26, 3 }
  0x35   : > { %s1555_s27 = scalar_select %p1356_p0, 1, 0 }
  0x36   : > { %s156_s6 = sand.u32 1, %s1150_s17   ;;  %s765_s28 = sshll.u32 %s1166_s21, 7 }
  0x37   : > { %1556 = sst [smem:[#allocation19_spill]] %s1555_s27  ;;  %p1368_p5 = por %p136_p8, %p54_p13 }
  0x38   : > { %s1363_s1 = scalar_select %p39_p9, %s1150_s17, %s41_s4  }
  0x39   : > { %s1558_s23 = scalar_select %p1368_p5, 1, 0 }
  0x3a   : > { %1557 = sst [smem:[#allocation20_spill]] %s1363_s1  ;;  %s717_s12 = sshll.u32 %s156_s6, 3 }
  0x3b   : > { %1559 = sst [smem:[#allocation21_spill]] %s1558_s23  ;;  %p1561_p3 = scmp.lt.s32.totalorder %s1170_s22, 4 }
  0x3c   : > { %s1560_s0 = sld [smem:[#allocation22_spill]]  ;;  %s160_s26 = scalar_lea.vmem [#allocation3], %s717_s12 }
  0x3d   : > { %p1379_p12 = pnand %p1561_p3, %p1333_p4  ;;  %s167_s4 = sshll.u32 %s160_s26, 4  ;;  %s168_s4 = int_to_ptr.vmem [resolvable:$true] %s167_s4 }
  0x3e   : > { %s1563_s5 = sand.u32 1, %s1138_s14   ;;  %s157_s1 = scalar_lea.sflag [#allocation4], %s156_s6 }
  0x3f   : > { %s723_s21 = sshll.u32 %s1563_s5, 6  ;;  %p992_p9 = pneg %p1379_p12 }
  0x40   : > { %s1003_s17 = scalar_lea.vmem %s168_s4, 128  ;;  %s1176_s3 = smov [#allocation3]  }
  0x41   : > { %p1004_p13 = scmp.ne.s32.totalorder %s168_s4, %s1003_s17 }
  0x42   : > { %s166_s30 = scalar_lea.hbm %s1560_s0, %s765_s28  ;;  %s1008_s28 = sshll.u32 %s1176_s3, 4  ;;  %s1009_s28 = int_to_ptr.vmem [resolvable:$false] %s1008_s28 }
  0x43   : > { %p1006_p2 = pnand %p1004_p13, %p992_p9  ;;  %s1010_s29 = scalar_lea.vmem %s1009_s28, 256 }
  0x44   : > { %p1011_p4 = scmp.lt.s32.totalorder %s168_s4, %s1009_s28  ;;  %p1012_p8 = scmp.lt.s32.totalorder %s1010_s29, %s1003_s17 }
  0x45   : > { %p1007_p6 = pneg %p1006_p2 }
  0x46   : > { %p1013_p3 = por %p1012_p8, %p1011_p4 }
  0x48   : > { %p1014_p5 = pnand %p1013_p3, %p1007_p6 }
  0x4a   : > { %1017 = shalt.err (!%p1014_p5)
}
  0x4b   : > { %s1177_s7 = smov 64   ;;  %s1178_s6 = smov 4  }
  0x4c   : > { %809 = dma.hbm_to_vmem [thread:$0]  (!%p1379_p12), %s166_s30, 128, %s168_s4, %s157_s1, %s1177_s7, %s1177_s7, %s1178_s6  }
  0x4d   : > { %s767_s12 = sshll.u32 %s1162_s20, 10  ;;  %s202_s3 = scalar_lea.vmem [#allocation8], %s723_s21 }
  0x4e   : > { %s208_s0 = scalar_lea.hbm %s1525_s2, %s767_s12  ;;  %s209_s14 = sshll.u32 %s202_s3, 4  ;;  %s210_s14 = int_to_ptr.vmem [resolvable:$true] %s209_s14 }
  0x4f   : > { %s1031_s28 = scalar_lea.vmem %s210_s14, 1024  ;;  %p1564_p13 = pneg %p1295_p7 }
  0x50   : > { %p1032_p9 = scmp.ne.s32.totalorder %s210_s14, %s1031_s28  ;;  %s1179_s17 = smov [#allocation8]  }
  0x51   : > { %s1036_s29 = sshll.u32 %s1179_s17, 4  ;;  %s1037_s29 = int_to_ptr.vmem [resolvable:$false] %s1036_s29 }
  0x52   : > { %p1034_p5 = pnand %p1032_p9, %p1564_p13  ;;  %s1038_s23 = scalar_lea.vmem %s1037_s29, 2048 }
  0x53   : > { %p1039_p6 = scmp.lt.s32.totalorder %s210_s14, %s1037_s29  ;;  %p1040_p12 = scmp.lt.s32.totalorder %s1038_s23, %s1031_s28 }
  0x54   : > { %p1035_p2 = pneg %p1034_p5 }
  0x55   : > { %p1041_p4 = por %p1040_p12, %p1039_p6 }
  0x57   : > { %p1042_p8 = pnand %p1041_p4, %p1035_p2 }
  0x59   : > { %1045 = shalt.err (!%p1042_p8)
}
  0x5a   : > { %815 = dma.hbm_to_vmem [thread:$0]  (!%p1295_p7), %s208_s0, 1024, %s210_s14, %s1300_s11, %s1177_s7, %s1177_s7, %s1178_s6  }
  0x5b   : > { %221 = sbr.rel (%p1313_p11) target bundleno = 612 (0x264), region = 32  ;;  %s1402_s1 = sand.u32 (!%p1313_p11), 1, %s1146_s16  }
  0x5c   : > { %s727_s21 = sshll.u32 (!%p1313_p11), %s1402_s1, 3  ;;  %s224_s30 = scalar_lea.sflag (!%p1313_p11), [#allocation4], %s1402_s1 }
  0x5d   : > { %s1406_s27 = scalar_lea.vmem (!%p1313_p11), [#allocation3], %s727_s21 }
  0x60   : > { %1117 = dma.done.wait (%p1343_p1), %s224_s30, 128  }
  0x61   : > { %1119 = vsyncadd (%p1343_p1), %s224_s30, 4294967168  ;;  %s232_s0 = sand.u32 1, %s1318_s25   ;;  %s234_s14 = sand.u32 1, %s1134_s13  }
  0x62   : > { %s728_s23 = sshll.u32 %s234_s14, 7  ;;  %s233_s10 = scalar_lea.sflag [#allocation7], %s232_s0 }
  0x63   : > { %s1414_s11 = scalar_lea.vmem [#allocation6], %s728_s23 }
  0x64   : > { %1121 = dma.done.wait (%p1350_p10), %s233_s10, 3072  }
  0x65   : > { %1123 = vsyncadd (%p1350_p10), %s233_s10, 4294964224  ;;  %s729_s8 = sshll.u32 %s234_s14, 6  ;;  %s730_s4 = sshll.u32 %s1402_s1, 4 }
  0x66   : > { %s1421_s7 = scalar_lea.vmem [#allocation8], %s729_s8  ;;  %s1423_s24 = scalar_lea.vmem [#allocation9], %s730_s4 }
  0x67   : > { %p731_p7 = scmp.ne.s32.totalorder %s1154_s18, 0 }
  0x69   : > { %286 = sbr.rel (%p731_p7) target bundleno = 112 (0x70), region = 48 }
  0x6e   : > { %v1180_v0 = vmov 0.0  }
  0x6f   : > { %287 = vst [vmem:[#allocation2] sm:$0xff] %v1180_v0  ;;  %288 = vst [vmem:[#allocation2 + $0x8] sm:$0xff] %v1180_v0 }
  0x70 PF: > { %v921_v1 = vld [vmem:[%s1414_s11 + $0x74] ss:$8 sps:$4 sm:$0xff]   ;;  %v923_v2 = vld [vmem:[%s1414_s11 + $0x70] ss:$8 sps:$4 sm:$0xff]   ;;  %v1181_v3 = vmov 0   ;;  %v1182_v20 = vmov 0.0  }
  0x71   : > { %425 = vmatprep.mubr.bf16.mxu0 %v1181_v3  ;;  %393 = vmatprep.subr.bf16.mxu0 %v921_v1  ;;  %v924_v4 = vld [vmem:[%s1414_s11 + $0x64] ss:$8 sps:$4 sm:$0xff]   ;;  %v926_v5 = vld [vmem:[%s1414_s11 + $0x60] ss:$8 sps:$4 sm:$0xff]   ;;  %v927_v6 = vld [vmem:[%s1414_s11 + $0x54] ss:$8 sps:$4 sm:$0xff]  }
  0x72   : > { %394 = vmatpush1.bf16.msra.mxu0 %v923_v2  ;;  %v929_v7 = vld [vmem:[%s1414_s11 + $0x50] ss:$8 sps:$4 sm:$0xff]   ;;  %v930_v8 = vld [vmem:[%s1414_s11 + $0x44] ss:$8 sps:$4 sm:$0xff]   ;;  %v932_v9 = vld [vmem:[%s1414_s11 + $0x40] ss:$8 sps:$4 sm:$0xff]   ;;  %778 = vmatprep.subr.bf16.mxu1 %v1182_v20 }
  0x73   : > { %395 = vmatprep.subr.bf16.mxu0 %v924_v4  ;;  %v933_v10 = vld [vmem:[%s1414_s11 + $0x34] ss:$8 sps:$4 sm:$0xff]   ;;  %v935_v11 = vld [vmem:[%s1414_s11 + $0x30] ss:$8 sps:$4 sm:$0xff]   ;;  %v936_v12 = vld [vmem:[%s1414_s11 + $0x24] ss:$8 sps:$4 sm:$0xff]  }
  0x74   : > { %v938_v13 = vld [vmem:[%s1414_s11 + $0x20] ss:$8 sps:$4 sm:$0xff]   ;;  %v939_v14 = vld [vmem:[%s1414_s11 + $0x14] ss:$8 sps:$4 sm:$0xff]   ;;  %v941_v15 = vld [vmem:[%s1414_s11 + $0x10] ss:$8 sps:$4 sm:$0xff]  }
  0x75   : > { %v942_v16 = vld [vmem:[%s1414_s11 + $0x4] ss:$8 sps:$4 sm:$0xff]   ;;  %v944_v17 = vld [vmem:[%s1414_s11] ss:$8 sps:$4 sm:$0xff]   ;;  %v945_v18 = vld [vmem:[%s1406_s27] sm:$0xff]   ;;  %vm1183_vm0 = vmmov 0  }
  0x76   : > { %396 = vmatpush1.bf16.msra.mxu0 %v926_v5  ;;  %v946_v19 = vld [vmem:[%s1421_s7 + $0x38] sm:$0xff]   ;;  %v947_v21 = vld [vmem:[%s1421_s7 + $0x30] sm:$0xff]   ;;  %v948_v22 = vld [vmem:[%s1421_s7 + $0x28] sm:$0xff]   ;;  %794 = vmatprep.mubr.msk.bf16.mxu1 %vm1183_vm0, %v1182_v20  ;;  %p759_p11 = scmp.ne.s32.totalorder %s1154_s18, 1 }
  0x77   : > { %397 = vmatprep.subr.bf16.mxu0 %v927_v6  ;;  %779 = vmatpush3.bf16.msra.mxu1 %v946_v19  ;;  %v949_v23 = vld [vmem:[%s1421_s7 + $0x20] sm:$0xff]   ;;  %v950_v24 = vld [vmem:[%s1421_s7 + $0x18] sm:$0xff]   ;;  %v951_v25 = vld [vmem:[%s1421_s7 + $0x10] sm:$0xff]  }
  0x78   : > { %780 = vmatprep.subr.bf16.mxu1 %v1182_v20  ;;  %v952_v26 = vld [vmem:[%s1421_s7 + $0x8] sm:$0xff]   ;;  %v953_v27 = vld [vmem:[%s1421_s7] sm:$0xff]  }
  0x79   : > { %v452_v45 = vld [vmem:[#allocation2] sm:$0xff]  ;;  %v453_v49 = vld [vmem:[#allocation2 + $0x8] sm:$0xff] }
  0x7a   : > { %398 = vmatpush1.bf16.msra.mxu0 %v929_v7 }
  0x7b   : > { %399 = vmatprep.subr.bf16.mxu0 %v930_v8  ;;  %781 = vmatpush3.bf16.msra.mxu1 %v947_v21 }
  0x7c   : > { %782 = vmatprep.subr.bf16.mxu1 %v1182_v20 }
  0x7e   : > { %400 = vmatpush1.bf16.msra.mxu0 %v932_v9 }
  0x7f   : > { %401 = vmatprep.subr.bf16.mxu0 %v933_v10  ;;  %783 = vmatpush3.bf16.msra.mxu1 %v948_v22 }
  0x80   : > { %784 = vmatprep.subr.bf16.mxu1 %v1182_v20 }
  0x82   : > { %402 = vmatpush1.bf16.msra.mxu0 %v935_v11 }
  0x83   : > { %403 = vmatprep.subr.bf16.mxu0 %v936_v12  ;;  %785 = vmatpush3.bf16.msra.mxu1 %v949_v23 }
  0x84   : > { %786 = vmatprep.subr.bf16.mxu1 %v1182_v20 }
  0x86   : > { %404 = vmatpush1.bf16.msra.mxu0 %v938_v13 }
  0x87   : > { %405 = vmatprep.subr.bf16.mxu0 %v939_v14  ;;  %787 = vmatpush3.bf16.msra.mxu1 %v950_v24 }
  0x88   : > { %788 = vmatprep.subr.bf16.mxu1 %v1182_v20 }
  0x8a   : > { %406 = vmatpush1.bf16.msra.mxu0 %v941_v15 }
  0x8b   : > { %407 = vmatprep.subr.bf16.mxu0 %v942_v16  ;;  %789 = vmatpush3.bf16.msra.mxu1 %v951_v25 }
  0x8c   : > { %790 = vmatprep.subr.bf16.mxu1 %v1182_v20 }
  0x8e   : > { %408 = vmatpush1.bf16.msra.mxu0 %v944_v17 }
  0x8f   : > { %791 = vmatpush3.bf16.msra.mxu1 %v952_v26 }
  0x90   : > { %792 = vmatprep.subr.bf16.mxu1 %v1182_v20 }
  0x91   : > { %426 = vmatmul.mubr.bf16.vlgmr.msra.gmra.mxu0 %v945_v18 }
  0x93   : > { %793 = vmatpush3.bf16.msra.mxu1 %v953_v27 }
 0x151   : > { %v427_v28 = vpop.f32.mrf.mxu0 }
 0x152   : > { %v749_v29 = vmul.f32 -1.442695, %v427_v28 }
 0x153   : > { %v429_v30 = vpop.f32.mrf.mxu0 }
 0x154   : > { %954 = vpow2.f32 %v749_v29 }
 0x155   : > { %v431_v31 = vpop.f32.mrf.mxu0 }
 0x156   : > { %v750_v32 = vmul.f32 -1.442695, %v431_v31 }
 0x157   : > { %v433_v41 = vpop.f32.mrf.mxu0 }
 0x158   : > { %956 = vpow2.f32 %v750_v32 }
 0x161   : > { %v955_v33 = vpop.eup %954 }
 0x162   : > { %v442_v34 = vadd.f32 1.0, %v955_v33 }
 0x164   : > { %958 = vrcp.f32 %v442_v34 }
 0x165   : > { %v957_v35 = vpop.eup %956 }
 0x166   : > { %v443_v36 = vadd.f32 1.0, %v957_v35 }
 0x168   : > { %960 = vrcp.f32 %v443_v36 }
 0x171   : > { %v959_v37 = vpop.eup %958 }
 0x172   : > { %v448_v38 = vmul.f32 %v959_v37, %v427_v28 }
 0x174   : > { %v450_v42 = vmul.f32 %v448_v38, %v429_v30 }
 0x175   : > { %v961_v39 = vpop.eup %960 }
 0x176   : > { %v449_v40 = vmul.f32 %v961_v39, %v431_v31 }
 0x178   : > { %v451_v43 = vmul.f32 %v449_v40, %v433_v41 }
 0x17a   : > { %v454_v44 = vpack.c.bf16 %v451_v43, %v450_v42 }
 0x17c   : > { %795 = vmatmul.mubr.bf16.vlgmr.msra.gmra.mxu1 %v454_v44 }
 0x23c   : > { %v553_v46 = vpop.f32.mrf.mxu1 }
 0x23d   : > { %v560_v47 = vadd.f32 %v553_v46, %v452_v45 }
 0x23e   : > { %v796_v48 = vpop.f32.mrf.mxu1 }
 0x23f   : > { %562 = vst [vmem:[#allocation2] sm:$0xff] %v560_v47  ;;  %567 = sbr.rel (%p759_p11) target bundleno = 588 (0x24c), region = 52 }
 0x240   : > { %v556_v50 = vpop.f32.mrf.mxu1 }
 0x241   : > { %v561_v51 = vadd.f32 %v556_v50, %v453_v49 }
 0x242   : > { %v797_v52 = vpop.f32.mrf.mxu1 }
 0x243   : > { %563 = vst [vmem:[#allocation2 + $0x8] sm:$0xff] %v561_v51 }
 0x246   : > { %v568_v53 = vld [vmem:[#allocation2] sm:$0xff] }
 0x247   : > { %570 = vst [vmem:[%s1423_s24] sm:$0xff] %v568_v53 }
 0x24a   : > { %v569_v54 = vld [vmem:[#allocation2 + $0x8] sm:$0xff] }
 0x24b   : > { %571 = vst [vmem:[%s1423_s24 + $0x8] sm:$0xff] %v569_v54 }
 0x24c PF: > { %s768_s9 = sshll.u32 %s1158_s19, 8  ;;  %s1566_s26 = sld [smem:[#allocation24_spill]] }
 0x24d   : > { %s586_s3 = sshll.u32 %s1423_s24, 4  ;;  %s573_s18 = scalar_lea.sflag [#allocation5], %s1402_s1  ;;  %s1461_s3 = int_to_ptr.vmem [resolvable:$true] %s586_s3 }
 0x24e   : > { %s1046_s28 = scalar_lea.vmem %s1461_s3, 256  ;;  %s1184_s17 = smov [#allocation9]  }
 0x24f   : > { %p1047_p1 = scmp.ne.s32.totalorder %s1461_s3, %s1046_s28  ;;  %s1050_s29 = sshll.u32 %s1184_s17, 4  ;;  %s1051_s29 = int_to_ptr.vmem [resolvable:$false] %s1050_s29 }
 0x250   : > { %s1052_s19 = scalar_lea.vmem %s1051_s29, 512  ;;  %p1053_p9 = scmp.lt.s32.totalorder %s1461_s3, %s1051_s29 }
 0x251   : > { %p1048_p10 = pnand %p1047_p1, %p1356_p0  ;;  %p1054_p13 = scmp.lt.s32.totalorder %s1052_s19, %s1046_s28 }
 0x252   : > { %s1458_s5 = scalar_lea.hbm %s1566_s26, %s768_s9 }
 0x253   : > { %p1049_p3 = pneg %p1048_p10  ;;  %p1055_p5 = por %p1054_p13, %p1053_p9 }
 0x255   : > { %p1056_p2 = pnand %p1055_p5, %p1049_p3 }
 0x257   : > { %1059 = shalt.err (!%p1056_p2)
}
 0x258   : > { %s1060_s21 = scalar_lea.hbm %s1458_s5, 256  ;;  %s1064_s0 = scalar_lea.hbm %s1566_s26, 512 }
 0x259   : > { %p1061_p6 = scmp.ne.s32.totalorder %s1458_s5, %s1060_s21  ;;  %p1065_p8 = scmp.lt.s32.totalorder %s1458_s5, %s1566_s26 }
 0x25a   : > { %p1066_p7 = scmp.lt.s32.totalorder %s1064_s0, %s1060_s21 }
 0x25b   : > { %p1062_p12 = pnand %p1061_p6, %p1356_p0 }
 0x25c   : > { %p1067_p11 = por %p1066_p7, %p1065_p8 }
 0x25d   : > { %p1063_p4 = pneg %p1062_p12 }
 0x25f   : > { %p1068_p1 = pnand %p1067_p11, %p1063_p4 }
 0x261   : > { %1071 = shalt.err (!%p1068_p1)
}
 0x262   : > { %s1185_s10 = smov 128   ;;  %s1186_s11 = smov 8  }
 0x263   : > { %804 = dma.vmem_to_hbm [thread:$0]  (%p1356_p0), %s1461_s3, 256, %s1458_s5, %s573_s18, %s1185_s10, %s1185_s10, %s1186_s11  }
 0x264 PF: > { %s1567_s8 = sld [smem:[#allocation21_spill]]  ;;  %p821_p10 = scmp.ge.s32.totalorder %s1170_s22, 2 }
 0x265   : > { %s601_s4 = sand.u32 1, %s1142_s15  }
 0x266   : > { %s602_s7 = scalar_lea.sflag [#allocation5], %s601_s4 }
 0x26a   : > { %p1568_p3 = scmp.ne.s32.totalorder %s1567_s8, 0 }
 0x26c   : > { %p817_p9 = pnand %p821_p10, %p1568_p3 }
 0x26e   : > { %p818_p13 = pneg %p817_p9 }
 0x270   : > { %1125 = dma.done.wait (%p818_p13), %s602_s7, 256  }
 0x271   : > { %1127 = vsyncadd (%p818_p13), %s602_s7, 4294967040  ;;  %s22_s22 = sadd.s32 1, %s1170_s22   ;;  %s1569_s24 = sld [smem:[#allocation13_spill]] }
 0x272   : > { %p19_p5 = scmp.ge.s32.totalorder %s22_s22, 6   ;;  %s1570_s14 = sld [smem:[#allocation17_spill]] }
 0x273   : > { %s1571_s1 = sld [smem:[#allocation14_spill]]  ;;  %s1576_s12 = smov %s1134_s13 }
 0x274   : > { %s1572_s17 = sld [smem:[#allocation20_spill]]  ;;  %s1578_s15 = smov %s1146_s16 }
 0x275   : > { %s1573_s19 = sld [smem:[#allocation15_spill]]  ;;  %s1580_s18 = smov %s1162_s20 }
 0x276   : > { %s1574_s25 = sld [smem:[#allocation16_spill]] }
 0x277   : > { %s1575_s21 = sld [smem:[#allocation18_spill]]  ;;  %s1577_s13 = smov %s1569_s24 }
 0x278   :  { %21 = sbr.rel (!%p19_p5) target bundleno = 15 (0xf), region = 109 }
 0x279   : > { %s1579_s16 = smov %s1571_s1 }
 0x27c   : > { %s1581_s20 = smov %s1574_s25 }
 0x27d   :  { %607 = vsyncpa [#allocation4], 1 }
 0x27e   :  { %609 = vsyncpa [#allocation4 + $0x1], 1 }
 0x27f   :  { %610 = vsyncpa [#allocation7], 1 }
 0x280   :  { %612 = vsyncpa [#allocation7 + $0x1], 1 }
 0x281   :  { %613 = vsyncpa [#allocation5], 1 }
 0x282   :  { %615 = vsyncpa [#allocation5 + $0x1], 1 }

</bundles_post_ra>
